<compile_context>
chip_gen: v7x
topology: tpu7x:2x2x1
jax: 0.10.0
libtpu: 0.0.40
codegen_flags: <defaults>
</compile_context>

<pallas_src>
import math

import jax
import jax.numpy as jnp
from jax.experimental import pallas as pl
from jax.experimental.pallas import tpu as pltpu


def _reins_fold_kernel(x_ref, w_ref, o_ref):
    # out = x + x @ W   (W already contains alpha^2 * A @ B @ C @ D)
    x = x_ref[...]
    acc = jnp.dot(x, w_ref[...], preferred_element_type=jnp.float32)
    o_ref[...] = (x.astype(jnp.float32) + acc).astype(o_ref.dtype)


def _reins_pallas(x, w, *, tm=256, compute_dtype=jnp.bfloat16):
    """out = x + x @ w.   x: (M, E), w: (E, E).  Returns (M, E) in x.dtype."""
    M, E = x.shape
    out_dtype = x.dtype

    # bf16 operands, f32 accumulation inside the kernel.
    x_c = x.astype(compute_dtype)
    w_c = w.astype(compute_dtype)

    # Row tile: big (256) for MXU occupancy / low per-step overhead, clamped to
    # M so a small problem is a single full-extent block (always layout-legal).
    tm_eff = min(tm, M)
    grid = (pl.cdiv(M, tm_eff),)

    # TODO(synk): for E < 128 fold several rows into the lane axis so output
    # stores are lane-dense (avoids masked vst.msk partial stores).

    comp_bytes = jnp.dtype(compute_dtype).itemsize
    out_bytes = jnp.dtype(out_dtype).itemsize
    cost = pl.CostEstimate(
        flops=2 * M * E * E + M * E,
        transcendentals=0,
        bytes_accessed=M * E * comp_bytes + E * E * comp_bytes + M * E * out_bytes,
    )

    return pl.pallas_call(
        _reins_fold_kernel,
        out_shape=jax.ShapeDtypeStruct((M, E), out_dtype),
        grid_spec=pltpu.PrefetchScalarGridSpec(
            num_scalar_prefetch=0,
            grid=grid,
            in_specs=[
                pl.BlockSpec((tm_eff, E), lambda i: (i, 0)),   # activation rows
                pl.BlockSpec((E, E), lambda i: (0, 0)),        # folded weight W
            ],
            out_specs=pl.BlockSpec((tm_eff, E), lambda i: (i, 0)),
        ),
        compiler_params=pltpu.CompilerParams(
            dimension_semantics=("parallel",),   # shards row tiles across TCs (v7x)
        ),
        cost_estimate=cost,
    )(x_c, w_c)


class MyReinsTokenPallas:
    """JAX/Pallas port of MyReinsToken (forward pass only)."""

    def __init__(self, num_layers, embed_dims, patch_size, query_dims=256,
                 token_length=100, rank=8, alpha=16, key=None):
        self.rank = rank
        self.alpha = float(alpha)
        self.num_layers = num_layers
        self.embed_dims = embed_dims
        self.patch_size = patch_size
        self.query_dims = query_dims
        self.token_length = token_length

        if key is None:
            key = jax.random.PRNGKey(0)
        k_tok, k_inv, k_c = jax.random.split(key, 3)

        # same init scheme as the PyTorch module (deterministic here)
        val = math.sqrt(6.0 / float(3 * patch_size * patch_size + embed_dims))
        self.tokens = jax.random.uniform(
            k_tok, (num_layers, token_length, embed_dims),
            dtype=jnp.float32, minval=-val, maxval=val)
        self.inverse_token = jax.random.uniform(
            k_inv, (num_layers, token_length, embed_dims),
            dtype=jnp.float32, minval=-val, maxval=val)
        std_dev = 1.0 / math.sqrt(float(rank))
        self.C = jax.random.normal(
            k_c, (embed_dims, rank * embed_dims), dtype=jnp.float32) * std_dev
        self.D = jnp.zeros((rank * embed_dims, embed_dims), dtype=jnp.float32)

    def _folded_weight(self, layer):
        # W = alpha^2 * (A @ B @ C @ D) in f32; one-time 2*(1+rank)*E^3-class
        # cost, amortized over the M-row hot path.
        a = self.tokens[layer]
        b = self.inverse_token[layer]
        ab = jnp.dot(a, b, preferred_element_type=jnp.float32)
        cd = jnp.dot(self.C, self.D, preferred_element_type=jnp.float32)
        w = jnp.dot(ab, cd, preferred_element_type=jnp.float32)
        return (self.alpha * self.alpha) * w

    def forward(self, feats, layer, batch_first=False, has_cls_token=True):
        # The PyTorch `feats @ tokens[layer]` only type-checks when
        # token_length == embed_dims; enforce that assumption explicitly.
        assert self.token_length == self.embed_dims, (
            "MyReinsToken forward requires token_length == embed_dims")

        if batch_first:
            feats = jnp.transpose(feats, (1, 0, 2))
        if has_cls_token:
            cls_token, rest = feats[:1], feats[1:]
        else:
            cls_token, rest = None, feats

        S, B, E = rest.shape
        x = rest.reshape(S * B, E)

        w = self._folded_weight(layer)
        out = _reins_pallas(x, w).reshape(S, B, E)

        if has_cls_token:
            out = jnp.concatenate([cls_token, out], axis=0)
        if batch_first:
            out = jnp.transpose(out, (1, 0, 2))
        return out

    # pure-JAX f32 reference (mirrors the PyTorch forward exactly)
    def forward_ref(self, feats, layer, batch_first=False, has_cls_token=True):
        if batch_first:
            feats = jnp.transpose(feats, (1, 0, 2))
        if has_cls_token:
            cls_token, rest = feats[:1], feats[1:]
        else:
            cls_token, rest = None, feats
        delta = self.alpha * (rest @ self.tokens[layer] @ self.inverse_token[layer])
        delta = self.alpha * (delta @ self.C @ self.D)
        rest = rest + delta
        if has_cls_token:
            rest = jnp.concatenate([cls_token, rest], axis=0)
        if batch_first:
            rest = jnp.transpose(rest, (1, 0, 2))
        return rest


if __name__ == "__main__":
    num_layers = 2
    embed_dims = 128       # multiple of 128 -> lane-dense output blocks
    token_length = 128     # forward requires token_length == embed_dims
    patch_size = 16
    rank = 4
    alpha = 16
    seq = 9                # 1 cls token + 8 patch tokens
    batch = 2

    key = jax.random.PRNGKey(0)
    k_params, k_d, k_feats, k_feats_bf = jax.random.split(key, 4)

    module = MyReinsTokenPallas(
        num_layers=num_layers,
        embed_dims=embed_dims,
        patch_size=patch_size,
        token_length=token_length,
        rank=rank,
        alpha=alpha,
        key=k_params,
    )

    # D is zero-initialized in the original module (so delta2 == 0); randomize
    # it here at a small scale so the C @ D path is actually exercised.
    module.D = jax.random.normal(
        k_d, (rank * embed_dims, embed_dims), dtype=jnp.float32) * 1e-4

    # case 1: seq-first layout with cls token (PyTorch default)
    feats = jax.random.normal(k_feats, (seq, batch, embed_dims), dtype=jnp.float32)
    out = module.forward(feats, layer=1, batch_first=False, has_cls_token=True)
    out = jax.block_until_ready(out)
    ref = module.forward_ref(feats, layer=1, batch_first=False, has_cls_token=True)
    assert out.shape == feats.shape
    assert jnp.allclose(out, ref, atol=5e-2, rtol=5e-2), "mismatch vs reference (case 1)"

    # case 2: batch-first layout, no cls token
    feats_bf = jax.random.normal(
        k_feats_bf, (batch, seq, embed_dims), dtype=jnp.float32)
    out2 = module.forward(feats_bf, layer=0, batch_first=True, has_cls_token=False)
    out2 = jax.block_until_ready(out2)
    ref2 = module.forward_ref(feats_bf, layer=0, batch_first=True, has_cls_token=False)
    assert out2.shape == feats_bf.shape
    assert jnp.allclose(out2, ref2, atol=5e-2, rtol=5e-2), "mismatch vs reference (case 2)"

    print("KERNEL_OK")
</pallas_src>

<mosaic_0001>
module attributes {stable_mosaic.version = 11 : i64} {
  func.func @_reins_fold_kernel(%arg0: i32, %arg1: memref<16x128xbf16, #tpu.memory_space<vmem>>, %arg2: memref<128x128xbf16, #tpu.memory_space<vmem>>, %arg3: memref<16x128xf32, #tpu.memory_space<vmem>>) attributes {dimension_semantics = [#tpu.dimension_semantics<parallel>], iteration_bounds = array<i64: 1>, scalar_prefetch = 0 : i64, scratch_operands = 0 : i64, tpu.core_type = #tpu.core_type<tc>, window_params = [{transform_indices = @transform_0, window_bounds = array<i64: 16, 128>}, {pipeline_mode = #tpu.pipeline_mode<synchronous>, transform_indices = @transform_1, window_bounds = array<i64: 128, 128>}, {transform_indices = @transform_2, window_bounds = array<i64: 16, 128>}]} {
    %c0 = arith.constant 0 : index
    %c0_0 = arith.constant 0 : index
    %0 = vector.load %arg1[%c0, %c0_0] : memref<16x128xbf16, #tpu.memory_space<vmem>>, vector<16x128xbf16>
    %c0_1 = arith.constant 0 : index
    %c0_2 = arith.constant 0 : index
    %1 = vector.load %arg2[%c0_1, %c0_2] : memref<128x128xbf16, #tpu.memory_space<vmem>>, vector<128x128xbf16>
    %cst = arith.constant dense<0.000000e+00> : vector<16x128xf32>
    %2 = tpu.matmul %0, %1, %cst {dimension_numbers = #tpu.dot_dimension_numbers<[1], [0], [0], [1], [0, 0, 1, 1], [], []>} : vector<16x128xbf16>, vector<128x128xbf16>, vector<16x128xf32> -> vector<16x128xf32>
    %3 = arith.extf %0 : vector<16x128xbf16> to vector<16x128xf32>
    %4 = arith.addf %3, %2 : vector<16x128xf32>
    %c0_3 = arith.constant 0 : index
    %c0_4 = arith.constant 0 : index
    %5 = vector.load %arg3[%c0_3, %c0_4] : memref<16x128xf32, #tpu.memory_space<vmem>>, vector<16x128xf32>
    tpu.vector_store %arg3[%c0_3, %c0_4], %4 {strides = array<i32>} : memref<16x128xf32, #tpu.memory_space<vmem>>, vector<16x128xf32>,
    return
  }
  func.func @transform_0(%arg0: i32) -> (i32, i32) {
    %c0_i32 = arith.constant 0 : i32
    %c0_i32_0 = arith.constant 0 : i32
    return %arg0, %c0_i32 : i32, i32
  }
  func.func @transform_1(%arg0: i32) -> (i32, i32) {
    %c0_i32 = arith.constant 0 : i32
    %c0_i32_0 = arith.constant 0 : i32
    %c0_i32_1 = arith.constant 0 : i32
    return %c0_i32, %c0_i32_0 : i32, i32
  }
  func.func @transform_2(%arg0: i32) -> (i32, i32) {
    %c0_i32 = arith.constant 0 : i32
    %c0_i32_0 = arith.constant 0 : i32
    return %arg0, %c0_i32 : i32, i32
  }
}

</mosaic_0001>

<bundles_post_ra>
// kernel: tpu_custom_call.1
= control target key start
LH: loop header
LB: loop body
LE: loop exit
PB: predicated region body
PF: predicated region fallthrough
CT: control target
= control target key end

     0   :  { %7 = vsyncpa [#allocation3], 0  ;;  %s367_s0 = inlined_call_operand.hbm [shape: bf16[16,128], index: 0, kind: input, shape index: {}]   ;;  %s368_s1 = inlined_call_operand.hbm [shape: bf16[128,128], index: 1, kind: input, shape index: {}]   ;;  %s369_s2 = inlined_call_operand.hbm [shape: f32[16,128], index: 2, kind: output, shape index: {}]  }
   0x1   :  { %8 = vsyncpa [#allocation6], 0 }
   0x2   :  { %9 = vsyncpa [#allocation4], 0  ;;  %s307_s9 = smov [#allocation2]   ;;  %s235_s13 = scalar_lea.hbm %s367_s0, 128 }
   0x3   :  { %s15_s10 = sshll.u32 %s307_s9, 4  ;;  %p236_p0 = scmp.ne.s32.totalorder %s367_s0, %s235_s13  ;;  %s16_s10 = int_to_ptr.vmem [resolvable:$true] %s15_s10 }
   0x4   :  { %p239_p1 = scmp.lt.u32.totalorder %s235_s13, %s367_s0 }
   0x6   :  { %p241_p2 = pnand %p239_p1, %p236_p0 }
   0x8   :  { %244 = shalt.err (!%p241_p2)
}
   0x9   :  { %s245_s18 = scalar_lea.vmem %s16_s10, 128  ;;  %p250_p4 = scmp.lt.s32.totalorder %s16_s10, %s16_s10 }
   0xa   :  { %p246_p3 = scmp.ne.s32.totalorder %s16_s10, %s245_s18  ;;  %p251_p5 = scmp.lt.s32.totalorder %s245_s18, %s245_s18 }
   0xc   :  { %p252_p6 = por %p251_p5, %p250_p4 }
   0xe   :  { %p253_p7 = pnand %p252_p6, %p246_p3 }
  0x10   :  { %256 = shalt.err (!%p253_p7)
}
  0x11   :  { %s308_s19 = smov 64   ;;  %s309_s20 = smov 4  }
  0x12   :  { %21 = dma.hbm_to_vmem [thread:$0]  %s367_s0, 128, %s16_s10, [#allocation3], %s308_s19, %s308_s19, %s309_s20  }
  0x13   :  { %s310_s23 = smov [#allocation5]   ;;  %s257_s27 = scalar_lea.hbm %s368_s1, 1024 }
  0x14   :  { %s27_s24 = sshll.u32 %s310_s23, 4  ;;  %p258_p8 = scmp.ne.s32.totalorder %s368_s1, %s257_s27  ;;  %s28_s24 = int_to_ptr.vmem [resolvable:$true] %s27_s24 }
  0x15   :  { %p261_p9 = scmp.lt.u32.totalorder %s257_s27, %s368_s1 }
  0x17   :  { %p263_p10 = pnand %p261_p9, %p258_p8 }
  0x19   :  { %266 = shalt.err (!%p263_p10)
}
  0x1a   :  { %s267_s4 = scalar_lea.vmem %s28_s24, 1024  ;;  %p272_p12 = scmp.lt.s32.totalorder %s28_s24, %s28_s24 }
  0x1b   :  { %p268_p11 = scmp.ne.s32.totalorder %s28_s24, %s267_s4  ;;  %p273_p13 = scmp.lt.s32.totalorder %s267_s4, %s267_s4 }
  0x1d   :  { %p274_p0 = por %p273_p13, %p272_p12 }
  0x1f   :  { %p275_p1 = pnand %p274_p0, %p268_p11 }
  0x21   :  { %278 = shalt.err (!%p275_p1)
}
  0x22   :  { %33 = dma.hbm_to_vmem [thread:$0]  %s368_s1, 1024, %s28_s24, [#allocation6], %s308_s19, %s308_s19, %s309_s20  }
  0x23   :  { %301 = dma.done.wait [#allocation3], 128  }
  0x24   :  { %302 = vsyncadd [#allocation3], 4294967168 }
  0x25   :  { %303 = dma.done.wait [#allocation6], 1024  }
  0x26   :  { %304 = vsyncadd [#allocation6], 4294966272  ;;  %v311_v0 = vmov 0.0   ;;  %vm312_vm0 = vmmov 0   ;;  %v225_v1 = vld [vmem:[#allocation5] sm:$0xff]   ;;  %v226_v2 = vld [vmem:[#allocation5 + $0x8] sm:$0xff]  }
  0x27   :  { %196 = vmatprep.subr.bf16.mxu0 %v311_v0  ;;  %212 = vmatprep.mubr.msk.bf16.mxu0 %vm312_vm0, %v311_v0  ;;  %v227_v3 = vld [vmem:[#allocation5 + $0x10] sm:$0xff]   ;;  %v228_v4 = vld [vmem:[#allocation5 + $0x18] sm:$0xff]   ;;  %v229_v5 = vld [vmem:[#allocation5 + $0x20] sm:$0xff]   ;;  %s313_s1 = smov [#allocation7]  }
  0x28   :  { %197 = vmatpush3.bf16.msra.mxu0 %v225_v1  ;;  %v230_v6 = vld [vmem:[#allocation5 + $0x28] sm:$0xff]   ;;  %v231_v7 = vld [vmem:[#allocation5 + $0x30] sm:$0xff]   ;;  %v232_v8 = vld [vmem:[#allocation5 + $0x38] sm:$0xff]   ;;  %s165_s6 = sshll.u32 %s313_s1, 4  ;;  %s166_s6 = int_to_ptr.vmem [resolvable:$true] %s165_s6 }
  0x29   :  { %198 = vmatprep.subr.bf16.mxu0 %v311_v0  ;;  %v41_v9 = vld [vmem:[#allocation2] sm:$0xff]   ;;  %s279_s7 = scalar_lea.vmem %s166_s6, 256  ;;  %p284_p3 = scmp.lt.s32.totalorder %s166_s6, %s166_s6 }
  0x2a   :  { %v154_v10 = vunpack.c.l.bf16 %v41_v9  ;;  %v155_v11 = vunpack.c.h.bf16 %v41_v9  ;;  %p280_p2 = scmp.ne.s32.totalorder %s166_s6, %s279_s7  ;;  %p285_p4 = scmp.lt.s32.totalorder %s279_s7, %s279_s7 }
  0x2c   :  { %199 = vmatpush3.bf16.msra.mxu0 %v226_v2  ;;  %p286_p5 = por %p285_p4, %p284_p3 }
  0x2d   :  { %200 = vmatprep.subr.bf16.mxu0 %v311_v0 }
  0x2e   :  { %p287_p6 = pnand %p286_p5, %p280_p2 }
  0x30   :  { %201 = vmatpush3.bf16.msra.mxu0 %v227_v3 }
  0x31   :  { %202 = vmatprep.subr.bf16.mxu0 %v311_v0 }
  0x34   :  { %203 = vmatpush3.bf16.msra.mxu0 %v228_v4 }
  0x35   :  { %204 = vmatprep.subr.bf16.mxu0 %v311_v0 }
  0x38   :  { %205 = vmatpush3.bf16.msra.mxu0 %v229_v5 }
  0x39   :  { %206 = vmatprep.subr.bf16.mxu0 %v311_v0 }
  0x3c   :  { %207 = vmatpush3.bf16.msra.mxu0 %v230_v6 }
  0x3d   :  { %208 = vmatprep.subr.bf16.mxu0 %v311_v0 }
  0x40   :  { %209 = vmatpush3.bf16.msra.mxu0 %v231_v7 }
  0x41   :  { %210 = vmatprep.subr.bf16.mxu0 %v311_v0 }
  0x44   :  { %211 = vmatpush3.bf16.msra.mxu0 %v232_v8 }
  0x47   :  { %213 = vmatmul.mubr.bf16.vlgmr.msra.gmra.mrb[0].mxu0 %v41_v9 }
 0x11a   :  { %v147_v12 = vpop.f32.mrb[0].mxu0 }
 0x11b   :  { %v156_v13 = vadd.f32 %v154_v10, %v147_v12  ;;  %v214_v14 = vpop.f32.mrb[1].mxu0 }
 0x11c   :  { %v150_v15 = vpop.f32.mrb[2].mxu0 }
 0x11d   :  { %158 = vst [vmem:[#allocation7] sm:$0xff] %v156_v13  ;;  %v157_v16 = vadd.f32 %v155_v11, %v150_v15  ;;  %v215_v17 = vpop.f32.mrb[3].mxu0 }
 0x11f   :  { %159 = vst [vmem:[#allocation7 + $0x8] sm:$0xff] %v157_v16 }
 0x120   :  { %290 = shalt.err (!%p287_p6)
}
 0x121   :  { %s291_s10 = scalar_lea.hbm %s369_s2, 256 }
 0x122   :  { %p292_p7 = scmp.ne.s32.totalorder %s369_s2, %s291_s10  ;;  %p295_p8 = scmp.lt.u32.totalorder %s291_s10, %s369_s2 }
 0x124   :  { %p297_p9 = pnand %p295_p8, %p292_p7 }
 0x126   :  { %300 = shalt.err (!%p297_p9)
}
 0x127   :  { %s314_s15 = smov 128   ;;  %s315_s16 = smov 8  }
 0x128   :  { %171 = dma.vmem_to_hbm [thread:$0]  %s166_s6, 256, %s369_s2, [#allocation4], %s314_s15, %s314_s15, %s315_s16  }
 0x129   :  { %305 = dma.done.wait [#allocation4], 256  }
 0x12a   :  { %306 = vsyncadd [#allocation4], 4294967040 }
 0x12b   :  { %175 = vsyncpa [#allocation3], 1 }
 0x12c   :  { %176 = vsyncpa [#allocation6], 1 }
 0x12d   :  { %177 = vsyncpa [#allocation4], 1 }

</bundles_post_ra>
